<compile_context>
chip_gen: v7x
topology: tpu7x:2x2x1
jax: 0.10.0
libtpu: 0.0.40
codegen_flags: <defaults>
</compile_context>

<pallas_src>
import jax
import jax.numpy as jnp
from jax import lax
from jax.experimental import pallas as pl
from jax.experimental.pallas import tpu as pltpu


def _round_up(x, m):
    return (x + m - 1) // m * m


def _maybe_pad(a, target_shape):
    pads = tuple((0, t - s) for s, t in zip(a.shape, target_shape))
    if any(p[1] for p in pads):
        return jnp.pad(a, pads)
    return a


def _linear_silu_kernel_noacc(x_ref, v_ref, s_ref, b_ref, o_ref):
    # Whole K fits in one tile: single MXU pass, fused scale + bias + SiLU.
    # x_ref: (tm, K)  v_ref: (tn, K)  s_ref/b_ref: (1, tn)  o_ref: (tm, tn)
    y = lax.dot_general(
        x_ref[...], v_ref[...],
        dimension_numbers=(((1,), (1,)), ((), ())),
        preferred_element_type=jnp.float32)
    y = y * s_ref[...] + b_ref[...]
    o_ref[...] = (y * jax.nn.sigmoid(y)).astype(o_ref.dtype)


def _linear_silu_kernel_acc(x_ref, v_ref, s_ref, b_ref, o_ref, acc_ref):
    # 3-D grid (M, N, K), reduction axis last, f32 VMEM accumulator.
    # x_ref: (tm, tk)  v_ref: (tn, tk)  s_ref/b_ref: (1, tn)
    # o_ref: (tm, tn)  acc_ref: (tm, tn) f32 scratch
    k = pl.program_id(2)

    @pl.when(k == 0)
    def _init():
        acc_ref[...] = jnp.zeros_like(acc_ref)

    # Contract K of x with K of v: weight stays in its native (N, K) layout.
    acc_ref[...] += lax.dot_general(
        x_ref[...], v_ref[...],
        dimension_numbers=(((1,), (1,)), ((), ())),
        preferred_element_type=jnp.float32)

    @pl.when(k == pl.num_programs(2) - 1)
    def _finalize():
        # Scaling W's rows by s == scaling y's columns by s.
        y = acc_ref[...] * s_ref[...] + b_ref[...]
        o_ref[...] = (y * jax.nn.sigmoid(y)).astype(o_ref.dtype)


@jax.jit
def linear_block(x, v, g, b):
    """Forward of LinearBlock.

    x: (B, in_nodes)          input
    v: (out_nodes, in_nodes)  weight_norm direction parameter
    g: (out_nodes,)           weight_norm magnitude parameter
    b: (out_nodes,)           bias
    """
    B, K = x.shape
    N = v.shape[0]

    # weight_norm(dim=0): per-output-row scale.  W is never materialized.
    v32 = v.astype(jnp.float32)
    scale = g.astype(jnp.float32) * lax.rsqrt(jnp.sum(v32 * v32, axis=1))  # (N,)

    # ---- tile selection (f32: sublane multiple of 8, lane multiple of 128) ---
    tm = min(_round_up(B, 8), 256)      # batch-row tile
    tn = min(_round_up(N, 128), 512)    # output-feature tile (lane dense)
    tk = min(_round_up(K, 128), 512)    # reduction tile

    Bp = _round_up(B, tm)
    Np = _round_up(N, tn)
    Kp = _round_up(K, tk)

    xp = _maybe_pad(x, (Bp, Kp))
    vp = _maybe_pad(v, (Np, Kp))
    sp = _maybe_pad(scale, (Np,)).reshape(1, Np)
    bp = _maybe_pad(b.astype(jnp.float32), (Np,)).reshape(1, Np)

    single_k = (Kp == tk)

    if single_k:
        grid = (Bp // tm, Np // tn)
        grid_spec = pltpu.PrefetchScalarGridSpec(
            num_scalar_prefetch=0,
            grid=grid,
            in_specs=[
                pl.BlockSpec((tm, tk), lambda i, j: (i, 0)),   # x row tile
                pl.BlockSpec((tn, tk), lambda i, j: (j, 0)),   # v (N, K) tile
                pl.BlockSpec((1, tn), lambda i, j: (0, j)),    # scale
                pl.BlockSpec((1, tn), lambda i, j: (0, j)),    # bias
            ],
            out_specs=pl.BlockSpec((tm, tn), lambda i, j: (i, j)),
            scratch_shapes=[],
        )
        kernel = _linear_silu_kernel_noacc
        dim_sem = ("parallel", "parallel")
    else:
        grid = (Bp // tm, Np // tn, Kp // tk)
        grid_spec = pltpu.PrefetchScalarGridSpec(
            num_scalar_prefetch=0,
            grid=grid,
            in_specs=[
                pl.BlockSpec((tm, tk), lambda i, j, k: (i, k)),   # x row tile
                pl.BlockSpec((tn, tk), lambda i, j, k: (j, k)),   # v (N, K) tile
                pl.BlockSpec((1, tn), lambda i, j, k: (0, j)),    # scale
                pl.BlockSpec((1, tn), lambda i, j, k: (0, j)),    # bias
            ],
            out_specs=pl.BlockSpec((tm, tn), lambda i, j, k: (i, j)),
            scratch_shapes=[pltpu.VMEM((tm, tn), jnp.float32)],
        )
        kernel = _linear_silu_kernel_acc
        dim_sem = ("parallel", "parallel", "arbitrary")

    out = pl.pallas_call(
        kernel,
        out_shape=jax.ShapeDtypeStruct((Bp, Np), x.dtype),
        grid_spec=grid_spec,
        compiler_params=pltpu.CompilerParams(
            dimension_semantics=dim_sem,
            vmem_limit_bytes=32 * 1024 * 1024,
        ),
    )(xp, vp, sp, bp)

    if (Bp, Np) != (B, N):
        out = out[:B, :N]
    return out


def _reference(x, v, g, b):
    row_norm = jnp.sqrt(jnp.sum(v * v, axis=1, keepdims=True))
    w = (g[:, None] / row_norm) * v
    y = x @ w.T + b[None, :]
    return y * jax.nn.sigmoid(y)


if __name__ == "__main__":
    in_nodes, out_nodes, batch = 32, 64, 8

    key = jax.random.PRNGKey(0)
    kx, kv, kb = jax.random.split(key, 3)

    x = jax.random.normal(kx, (batch, in_nodes), dtype=jnp.float32)

    # PyTorch-style init: v ~ U(-1/sqrt(in), 1/sqrt(in)); g = ||v||_row
    # (weight_norm default); bias ~ U(-1/sqrt(in), 1/sqrt(in)).
    bound = 1.0 / (in_nodes ** 0.5)
    v = jax.random.uniform(kv, (out_nodes, in_nodes),
                           minval=-bound, maxval=bound, dtype=jnp.float32)
    g = jnp.sqrt(jnp.sum(v * v, axis=1))
    b = jax.random.uniform(kb, (out_nodes,),
                           minval=-bound, maxval=bound, dtype=jnp.float32)

    out = linear_block(x, v, g, b)
    out = jax.block_until_ready(out)

    ref = _reference(x, v, g, b)
    assert out.shape == (batch, out_nodes)
    assert jnp.allclose(out, ref, atol=1e-5, rtol=1e-5)

    print("KERNEL_OK")
</pallas_src>

<mosaic_0001>
module attributes {stable_mosaic.version = 11 : i64} {
  func.func @_linear_silu_kernel_noacc(%arg0: i32, %arg1: i32, %arg2: memref<8x128xf32, #tpu.memory_space<vmem>>, %arg3: memref<128x128xf32, #tpu.memory_space<vmem>>, %arg4: memref<1x128xf32, #tpu.memory_space<vmem>>, %arg5: memref<1x128xf32, #tpu.memory_space<vmem>>, %arg6: memref<8x128xf32, #tpu.memory_space<vmem>>) attributes {dimension_semantics = [#tpu.dimension_semantics<parallel>, #tpu.dimension_semantics<parallel>], iteration_bounds = array<i64: 1, 1>, scalar_prefetch = 0 : i64, scratch_operands = 0 : i64, tpu.core_type = #tpu.core_type<tc>, window_params = [{transform_indices = @transform_0, window_bounds = array<i64: 8, 128>}, {transform_indices = @transform_1, window_bounds = array<i64: 128, 128>}, {transform_indices = @transform_2, window_bounds = array<i64: 1, 128>}, {transform_indices = @transform_3, window_bounds = array<i64: 1, 128>}, {transform_indices = @transform_4, window_bounds = array<i64: 8, 128>}]} {
    %c0 = arith.constant 0 : index
    %c0_0 = arith.constant 0 : index
    %0 = vector.load %arg2[%c0, %c0_0] : memref<8x128xf32, #tpu.memory_space<vmem>>, vector<8x128xf32>
    %c0_1 = arith.constant 0 : index
    %c0_2 = arith.constant 0 : index
    %1 = vector.load %arg3[%c0_1, %c0_2] : memref<128x128xf32, #tpu.memory_space<vmem>>, vector<128x128xf32>
    %cst = arith.constant dense<0.000000e+00> : vector<8x128xf32>
    %2 = tpu.matmul %0, %1, %cst {dimension_numbers = #tpu.dot_dimension_numbers<[1], [1], [0], [0], [0, 0, 1, 0], [], []>} : vector<8x128xf32>, vector<128x128xf32>, vector<8x128xf32> -> vector<8x128xf32>
    %c0_3 = arith.constant 0 : index
    %c0_4 = arith.constant 0 : index
    %3 = vector.load %arg4[%c0_3, %c0_4] : memref<1x128xf32, #tpu.memory_space<vmem>>, vector<1x128xf32>
    %4 = vector.broadcast %3 : vector<1x128xf32> to vector<8x128xf32>
    %5 = arith.mulf %2, %4 : vector<8x128xf32>
    %c0_5 = arith.constant 0 : index
    %c0_6 = arith.constant 0 : index
    %6 = vector.load %arg5[%c0_5, %c0_6] : memref<1x128xf32, #tpu.memory_space<vmem>>, vector<1x128xf32>
    %7 = vector.broadcast %6 : vector<1x128xf32> to vector<8x128xf32>
    %8 = arith.addf %5, %7 : vector<8x128xf32>
    %9 = arith.negf %8 : vector<8x128xf32>
    %10 = math.exp %9 : vector<8x128xf32>
    %cst_7 = arith.constant 1.000000e+00 : f32
    %11 = vector.broadcast %cst_7 : f32 to vector<8x128xf32>
    %12 = arith.addf %11, %10 : vector<8x128xf32>
    %13 = arith.divf %11, %12 : vector<8x128xf32>
    %14 = arith.mulf %8, %13 : vector<8x128xf32>
    %c0_8 = arith.constant 0 : index
    %c0_9 = arith.constant 0 : index
    %15 = vector.load %arg6[%c0_8, %c0_9] : memref<8x128xf32, #tpu.memory_space<vmem>>, vector<8x128xf32>
    tpu.vector_store %arg6[%c0_8, %c0_9], %14 {strides = array<i32>} : memref<8x128xf32, #tpu.memory_space<vmem>>, vector<8x128xf32>,
    return
  }
  func.func @transform_0(%arg0: i32, %arg1: i32) -> (i32, i32) {
    %c0_i32 = arith.constant 0 : i32
    %c0_i32_0 = arith.constant 0 : i32
    return %arg0, %c0_i32 : i32, i32
  }
  func.func @transform_1(%arg0: i32, %arg1: i32) -> (i32, i32) {
    %c0_i32 = arith.constant 0 : i32
    %c0_i32_0 = arith.constant 0 : i32
    return %arg1, %c0_i32 : i32, i32
  }
  func.func @transform_2(%arg0: i32, %arg1: i32) -> (i32, i32) {
    %c0_i32 = arith.constant 0 : i32
    %c0_i32_0 = arith.constant 0 : i32
    return %c0_i32, %arg1 : i32, i32
  }
  func.func @transform_3(%arg0: i32, %arg1: i32) -> (i32, i32) {
    %c0_i32 = arith.constant 0 : i32
    %c0_i32_0 = arith.constant 0 : i32
    return %c0_i32, %arg1 : i32, i32
  }
  func.func @transform_4(%arg0: i32, %arg1: i32) -> (i32, i32) {
    %c0_i32 = arith.constant 0 : i32
    return %arg0, %arg1 : i32, i32
  }
}

</mosaic_0001>

<bundles_post_ra>
// kernel: linear_block.1
= control target key start
LH: loop header
LB: loop body
LE: loop exit
PB: predicated region body
PF: predicated region fallthrough
CT: control target
= control target key end

     0   :  { %v254_v2 = vmov 0.0|0.0   ;;  %vm255_vm0 = vmmov 0   ;;  %v256_v4 = vmov 0.0   ;;  %s352_s0 = inlined_call_operand.vmem [shape: f32[8,128], index: 0, kind: input, shape index: {}]   ;;  %s353_s1 = inlined_call_operand.vmem [shape: f32[128,128], index: 1, kind: input, shape index: {}]   ;;  %s354_s2 = inlined_call_operand.vmem [shape: f32[1,128], index: 2, kind: input, shape index: {}]   ;;  %s355_s3 = inlined_call_operand.vmem [shape: f32[1,128], index: 3, kind: input, shape index: {}]   ;;  %s356_s4 = inlined_call_operand.hbm [shape: f32[8,128], index: 4, kind: output, shape index: {}]  }
   0x1   :  { %v19_v0 = vld [vmem:[%s353_s1] sm:$0xff]  ;;  %v20_v1 = vld [vmem:[%s353_s1 + $0x8] sm:$0xff]  ;;  %198 = vmatprep.subr.bf16.mxu0 %v254_v2  ;;  %195 = vmatprep.mubr.msk.f32.mxu0 %vm255_vm0, %v256_v4  ;;  %v21_v5 = vld [vmem:[%s353_s1 + $0x10] sm:$0xff] }
   0x2   :  { %v199_v3 = vpack.c.bf16 %v20_v1, %v19_v0  ;;  %v22_v6 = vld [vmem:[%s353_s1 + $0x18] sm:$0xff] }
   0x4   :  { %200 = vmatpush3.bf16.xpose.msra.mxu0 %v199_v3 }
   0x5   :  { %201 = vmatprep.subr.bf16.mxu0 %v254_v2 }
   0x6   :  { %9 = vsyncpa [#allocation3], 0  ;;  %v202_v7 = vpack.c.bf16 %v22_v6, %v21_v5  ;;  %v23_v8 = vld [vmem:[%s353_s1 + $0x20] sm:$0xff]  ;;  %v24_v9 = vld [vmem:[%s353_s1 + $0x28] sm:$0xff] }
   0x7   :  { %v205_v10 = vpack.c.bf16 %v24_v9, %v23_v8  ;;  %v25_v11 = vld [vmem:[%s353_s1 + $0x30] sm:$0xff]  ;;  %v26_v12 = vld [vmem:[%s353_s1 + $0x38] sm:$0xff]  ;;  %v27_v14 = vld [vmem:[%s353_s1 + $0x40] sm:$0xff] }
   0x8   :  { %v208_v13 = vpack.c.bf16 %v26_v12, %v25_v11  ;;  %v28_v15 = vld [vmem:[%s353_s1 + $0x48] sm:$0xff]  ;;  %v29_v17 = vld [vmem:[%s353_s1 + $0x50] sm:$0xff]  ;;  %v30_v18 = vld [vmem:[%s353_s1 + $0x58] sm:$0xff] }
   0x9   :  { %v211_v16 = vpack.c.bf16 %v28_v15, %v27_v14  ;;  %v214_v19 = vpack.c.bf16 %v30_v18, %v29_v17  ;;  %v31_v20 = vld [vmem:[%s353_s1 + $0x60] sm:$0xff]  ;;  %v32_v21 = vld [vmem:[%s353_s1 + $0x68] sm:$0xff]  ;;  %v33_v23 = vld [vmem:[%s353_s1 + $0x70] sm:$0xff] }
   0xa   :  { %v217_v22 = vpack.c.bf16 %v32_v21, %v31_v20  ;;  %v34_v24 = vld [vmem:[%s353_s1 + $0x78] sm:$0xff]  ;;  %v18_v26 = vld [vmem:[%s352_s0] sm:$0xff]  ;;  %s257_s1 = smov [#allocation2]  }
   0xb   :  { %v220_v25 = vpack.c.bf16 %v34_v24, %v33_v23  ;;  %v143_v27 = vld [vmem:[%s354_s2] ss:$0 sm:$0xff]  ;;  %s135_s0 = sshll.u32 %s257_s1, 4  ;;  %s136_s0 = int_to_ptr.vmem [resolvable:$true] %s135_s0 }
   0xc   :  { %203 = vmatpush3.bf16.xpose.msra.mxu0 %v202_v7  ;;  %v144_v29 = vld [vmem:[%s355_s3] ss:$0 sm:$0xff]  ;;  %s230_s2 = scalar_lea.vmem %s136_s0, 128  ;;  %p235_p1 = scmp.lt.s32.totalorder %s136_s0, %s136_s0 }
   0xd   :  { %204 = vmatprep.subr.bf16.mxu0 %v254_v2  ;;  %p231_p0 = scmp.ne.s32.totalorder %s136_s0, %s230_s2  ;;  %p236_p2 = scmp.lt.s32.totalorder %s230_s2, %s230_s2 }
   0xf   :  { %p237_p3 = por %p236_p2, %p235_p1 }
  0x11   :  { %p238_p4 = pnand %p237_p3, %p231_p0 }
  0x14   :  { %206 = vmatpush3.bf16.xpose.msra.mxu0 %v205_v10 }
  0x15   :  { %207 = vmatprep.subr.bf16.mxu0 %v254_v2 }
  0x1c   :  { %209 = vmatpush3.bf16.xpose.msra.mxu0 %v208_v13 }
  0x1d   :  { %210 = vmatprep.subr.bf16.mxu0 %v254_v2 }
  0x24   :  { %212 = vmatpush3.bf16.xpose.msra.mxu0 %v211_v16 }
  0x25   :  { %213 = vmatprep.subr.bf16.mxu0 %v254_v2 }
  0x2c   :  { %215 = vmatpush3.bf16.xpose.msra.mxu0 %v214_v19 }
  0x2d   :  { %216 = vmatprep.subr.bf16.mxu0 %v254_v2 }
  0x34   :  { %218 = vmatpush3.bf16.xpose.msra.mxu0 %v217_v22 }
  0x35   :  { %219 = vmatprep.subr.bf16.mxu0 %v254_v2 }
  0x3c   :  { %221 = vmatpush3.bf16.xpose.msra.mxu0 %v220_v25 }
  0x43   :  { %196 = vmatmul.mubr.f32.vlgmr.msra.gmra.mrb[0].mxu0 %v18_v26 }
 0x116   :  { %v101_v28 = vpop.f32.mrb[0].mxu0 }
 0x117   :  { %v112_v30 = vmul.f32 %v143_v27, %v101_v28  ;;  %v197_v31 = vpop.f32.mrb[1].mxu0 }
 0x119   :  { %v120_v32 = vadd.f32 %v144_v29, %v112_v30 }
 0x11b   :  { %v145_v33 = vmul.f32 -1.442695, %v120_v32 }
 0x11d   :  { %226 = vpow2.f32 %v145_v33 }
 0x127   :  { %v227_v34 = vpop.eup %226 }
 0x128   :  { %v124_v35 = vadd.f32 1.0, %v227_v34 }
 0x12a   :  { %228 = vrcp.f32 %v124_v35 }
 0x134   :  { %v229_v36 = vpop.eup %228 }
 0x135   :  { %v127_v37 = vmul.f32 %v229_v36, %v120_v32 }
 0x137   :  { %128 = vst [vmem:[#allocation2] sm:$0xff] %v127_v37 }
 0x138   :  { %241 = shalt.err (!%p238_p4)
}
 0x139   :  { %s242_s28 = scalar_lea.hbm %s356_s4, 128 }
 0x13a   :  { %p243_p5 = scmp.ne.s32.totalorder %s356_s4, %s242_s28  ;;  %p246_p6 = scmp.lt.u32.totalorder %s242_s28, %s356_s4 }
 0x13c   :  { %p248_p7 = pnand %p246_p6, %p243_p5 }
 0x13e   :  { %251 = shalt.err (!%p248_p7)
}
 0x13f   :  { %138 = dma.vmem_to_hbm [thread:$0]  %s136_s0, 128, %s356_s4, [#allocation3]  }
 0x140   :  { %252 = dma.done.wait [#allocation3], 128  }
 0x141   :  { %253 = vsyncadd [#allocation3], 4294967168 }
 0x142   :  { %142 = vsyncpa [#allocation3], 1 }

</bundles_post_ra>
